<compile_context>
chip_gen: v6e
topology: v6e:2x2x1
jax: 0.10.0
libtpu: 0.0.40
codegen_flags: <defaults>
</compile_context>

<pallas_src>
import functools

import jax
import jax.numpy as jnp
from jax.experimental import pallas as pl
from jax.experimental.pallas import tpu as pltpu


def _round_up(x: int, m: int) -> int:
    return ((x + m - 1) // m) * m


def value_net_kernel(x_ref, w1_ref, b1_ref, w2_ref, b2_ref, w3_ref, b3_ref, o_ref):
    """Fused forward for one batch tile: relu(x@W1+b1) -> relu(.@W2+b2) -> .@w3+b3."""
    w1 = w1_ref[...]
    # State is streamed raw f32; cast to the weight dtype (bf16 fast path) here,
    # on-chip, instead of materializing a padded bf16 copy in HBM.
    x = x_ref[...].astype(w1.dtype)

    # Layer 1 (MXU, f32 accumulate) + bias + ReLU on the VPU in f32.
    h1 = jnp.dot(x, w1, preferred_element_type=jnp.float32) + b1_ref[...]
    h1 = jnp.maximum(h1, 0.0)

    # Layer 2: cast activations back to the weight dtype for the MXU.
    w2 = w2_ref[...]
    h2 = jnp.dot(h1.astype(w2.dtype), w2, preferred_element_type=jnp.float32) + b2_ref[...]
    h2 = jnp.maximum(h2, 0.0)

    # Final (out_features == 1) layer: VPU multiply + XLU lane reduction, f32.
    v = jnp.sum(h2 * w3_ref[...], axis=-1, keepdims=True) + b3_ref[...]
    o_ref[...] = v.astype(o_ref.dtype)


def prepare_params(params, *, use_bf16: bool = True):
    """Pad / cast the weights ONCE (hoisted out of the per-call forward).

    Input layout: w1 (state_dim, hidden), b1 (1, hidden), w2 (hidden, hidden),
    b2 (1, hidden), w3 (hidden, 1), b3 (1, 1)  -- i.e. (in, out) layout.
    Only the hidden (output/lane) axis is padded to a multiple of 128; the
    layer-1 contraction dim (state_dim) is left unpadded.
    """
    w1, b1, w2, b2, w3, b3 = params
    state_dim, hidden_dim = w1.shape
    H = _round_up(hidden_dim, 128)
    w_dtype = jnp.bfloat16 if use_bf16 else jnp.float32

    w1p = jnp.zeros((state_dim, H), w_dtype).at[:, :hidden_dim].set(w1.astype(w_dtype))
    b1p = jnp.zeros((1, H), jnp.float32).at[:, :hidden_dim].set(b1.astype(jnp.float32))
    w2p = jnp.zeros((H, H), w_dtype).at[:hidden_dim, :hidden_dim].set(w2.astype(w_dtype))
    b2p = jnp.zeros((1, H), jnp.float32).at[:, :hidden_dim].set(b2.astype(jnp.float32))
    w3row = jnp.zeros((1, H), jnp.float32).at[:, :hidden_dim].set(
        w3.reshape(1, hidden_dim).astype(jnp.float32))
    b3s = b3.reshape(1, 1).astype(jnp.float32)
    return (w1p, b1p, w2p, b2p, w3row, b3s)


@functools.partial(jax.jit, static_argnames=("batch_tile",))
def value_network_forward(state, prepared_params, *, batch_tile: int = 4096):
    """state: (B, state_dim) f32; prepared_params from prepare_params().

    Returns (B, 1) f32.
    """
    w1p, b1p, w2p, b2p, w3row, b3s = prepared_params
    B, state_dim = state.shape
    S_in, H = w1p.shape
    assert S_in == state_dim, "state_dim mismatch between state and prepared params"

    # Batch tile: multiple of 8 (f32 sublanes), capped at ceil(B/2) so the
    # "parallel" grid axis has >= 2 steps whenever B > 8 (keeps both v7x
    # TensorCores busy), and capped at batch_tile to bound VMEM.
    half = _round_up(max((B + 1) // 2, 1), 8)
    TB = max(8, min(batch_tile, half))
    Bp = _round_up(B, TB)
    num_tiles = Bp // TB

    # Only the batch axis is ever padded (f32, no feature-dim pad).  Padded
    # rows compute relu(b1)-driven garbage that is sliced off at the end.
    x = state if Bp == B else jnp.pad(state, ((0, Bp - B), (0, 0)))

    w_bytes = (S_in * H + H * H) * w1p.dtype.itemsize
    flops = 2 * Bp * (state_dim * H + H * H + H)
    bytes_accessed = int(
        B * state_dim * 4          # raw f32 state stream
        + w_bytes                  # W1, W2
        + (3 * H + 1) * 4          # b1, b2, w3_row, b3
        + Bp * 4                   # output
    )

    out = pl.pallas_call(
        value_net_kernel,
        out_shape=jax.ShapeDtypeStruct((Bp, 1), jnp.float32),
        grid=(num_tiles,),
        in_specs=[
            # Streamed, double-buffered state tile: raw f32, last dim = full dim.
            pl.BlockSpec((TB, state_dim), lambda i: (i, 0)),
            # Weights / biases: constant index maps -> VMEM-resident, no re-DMA.
            pl.BlockSpec((S_in, H), lambda i: (0, 0)),   # W1 (no contraction pad)
            pl.BlockSpec((1, H), lambda i: (0, 0)),      # b1
            pl.BlockSpec((H, H), lambda i: (0, 0)),      # W2
            pl.BlockSpec((1, H), lambda i: (0, 0)),      # b2
            pl.BlockSpec((1, H), lambda i: (0, 0)),      # w3 as a row vector
            pl.BlockSpec((1, 1), lambda i: (0, 0)),      # b3
        ],
        # NOTE: (TB, 1) store is lane-sparse; a lane-dense (1, TB) relayout is
        # deferred until profiling shows the store slot on the critical path.
        out_specs=pl.BlockSpec((TB, 1), lambda i: (i, 0)),
        compiler_params=pltpu.CompilerParams(
            dimension_semantics=("parallel",),
            vmem_limit_bytes=48 * 1024 * 1024,
        ),
        cost_estimate=pl.CostEstimate(
            flops=flops, transcendentals=0, bytes_accessed=bytes_accessed
        ),
    )(x, w1p, b1p, w2p, b2p, w3row, b3s)

    return out[:B]


def init_params(key, state_dim, hidden_dim, init_w):
    """Deterministic init mirroring torch.nn.Linear defaults + custom logits init."""
    k1, k2, k3, k4, k5, k6 = jax.random.split(key, 6)

    bound1 = 1.0 / jnp.sqrt(state_dim)
    w1 = jax.random.uniform(k1, (state_dim, hidden_dim), jnp.float32, -bound1, bound1)
    b1 = jax.random.uniform(k2, (1, hidden_dim), jnp.float32, -bound1, bound1)

    bound2 = 1.0 / jnp.sqrt(hidden_dim)
    w2 = jax.random.uniform(k3, (hidden_dim, hidden_dim), jnp.float32, -bound2, bound2)
    b2 = jax.random.uniform(k4, (1, hidden_dim), jnp.float32, -bound2, bound2)

    # logits layer: custom U(-init_w, init_w) as in the PyTorch __init__.
    w3 = jax.random.uniform(k5, (hidden_dim, 1), jnp.float32, -init_w, init_w)
    b3 = jax.random.uniform(k6, (1, 1), jnp.float32, -init_w, init_w)

    return (w1, b1, w2, b2, w3, b3)


def reference_forward_f32(state, params):
    """Plain-JAX f32 reference (exact module semantics)."""
    w1, b1, w2, b2, w3, b3 = params
    x = jnp.maximum(state @ w1 + b1, 0.0)
    x = jnp.maximum(x @ w2 + b2, 0.0)
    return x @ w3 + b3


def reference_forward_mixed(state, params):
    """Plain-JAX reference matching the kernel's bf16-input / f32-accumulate path."""
    w1, b1, w2, b2, w3, b3 = params
    bf = jnp.bfloat16
    h1 = jnp.dot(state.astype(bf), w1.astype(bf), preferred_element_type=jnp.float32) + b1
    h1 = jnp.maximum(h1, 0.0)
    h2 = jnp.dot(h1.astype(bf), w2.astype(bf), preferred_element_type=jnp.float32) + b2
    h2 = jnp.maximum(h2, 0.0)
    return jnp.sum(h2 * w3.reshape(1, -1), axis=-1, keepdims=True) + b3.reshape(1, 1)


if __name__ == "__main__":
    # Small shapes consistent with the module (feature_extractor is None, so the
    # forward expects a flat state vector per example).
    batch = 8
    state_dim = 16
    hidden_dim = 32
    init_w = 3e-3

    key = jax.random.PRNGKey(0)
    k_state, k_params, k_big = jax.random.split(key, 3)

    state = jax.random.normal(k_state, (batch, state_dim), dtype=jnp.float32)
    params = init_params(k_params, state_dim, hidden_dim, init_w)

    # Parameter padding / casting hoisted out of the per-call forward.
    prepared_bf16 = prepare_params(params, use_bf16=True)
    prepared_f32 = prepare_params(params, use_bf16=False)

    out = value_network_forward(state, prepared_bf16)
    out = jax.block_until_ready(out)
    assert out.shape == (batch, 1)

    # Tight check against a reference that follows the same bf16-input /
    # f32-accumulate numerics as the kernel.
    ref_mixed = reference_forward_mixed(state, params)
    assert jnp.allclose(out, ref_mixed, atol=1e-4, rtol=1e-4)

    # Loose check against the exact f32 module semantics (bf16 rounding only).
    ref_f32 = reference_forward_f32(state, params)
    assert jnp.allclose(out, ref_f32, atol=5e-3, rtol=5e-2)

    # Exact-parity path (f32 weights) should match the module semantics tightly.
    out_f32 = jax.block_until_ready(value_network_forward(state, prepared_f32))
    assert jnp.allclose(out_f32, ref_f32, atol=1e-5, rtol=1e-5)

    # Exercise the batch grid: >1 tile (TB capped at ceil(B/2)) and a padded
    # remainder of batch rows.
    big_batch = 1100
    big_state = jax.random.normal(k_big, (big_batch, state_dim), dtype=jnp.float32)
    big_out = jax.block_until_ready(value_network_forward(big_state, prepared_bf16))
    assert big_out.shape == (big_batch, 1)
    assert jnp.allclose(big_out, reference_forward_mixed(big_state, params),
                        atol=1e-4, rtol=1e-4)

    # Smaller explicit tile -> more grid steps, padded batch (1100 -> 1280).
    big_out2 = jax.block_until_ready(
        value_network_forward(big_state, prepared_bf16, batch_tile=256)
    )
    assert jnp.allclose(big_out2, reference_forward_mixed(big_state, params),
                        atol=1e-4, rtol=1e-4)

    print("KERNEL_OK")
</pallas_src>

<mosaic_0001>
module attributes {stable_mosaic.version = 11 : i64} {
  func.func @value_net_kernel(%arg0: i32, %arg1: memref<8x16xf32, #tpu.memory_space<vmem>>, %arg2: memref<16x128xbf16, #tpu.memory_space<vmem>>, %arg3: memref<1x128xf32, #tpu.memory_space<vmem>>, %arg4: memref<128x128xbf16, #tpu.memory_space<vmem>>, %arg5: memref<1x128xf32, #tpu.memory_space<vmem>>, %arg6: memref<1x128xf32, #tpu.memory_space<vmem>>, %arg7: memref<1x1xf32, #tpu.memory_space<vmem>>, %arg8: memref<8x1xf32, #tpu.memory_space<vmem>>) attributes {dimension_semantics = [#tpu.dimension_semantics<parallel>], iteration_bounds = array<i64: 1>, scalar_prefetch = 0 : i64, scratch_operands = 0 : i64, tpu.core_type = #tpu.core_type<tc>, window_params = [{transform_indices = @transform_0, window_bounds = array<i64: 8, 16>}, {pipeline_mode = #tpu.pipeline_mode<synchronous>, transform_indices = @transform_1, window_bounds = array<i64: 16, 128>}, {pipeline_mode = #tpu.pipeline_mode<synchronous>, transform_indices = @transform_2, window_bounds = array<i64: 1, 128>}, {pipeline_mode = #tpu.pipeline_mode<synchronous>, transform_indices = @transform_3, window_bounds = array<i64: 128, 128>}, {pipeline_mode = #tpu.pipeline_mode<synchronous>, transform_indices = @transform_4, window_bounds = array<i64: 1, 128>}, {pipeline_mode = #tpu.pipeline_mode<synchronous>, transform_indices = @transform_5, window_bounds = array<i64: 1, 128>}, {pipeline_mode = #tpu.pipeline_mode<synchronous>, transform_indices = @transform_6, window_bounds = array<i64: 1, 1>}, {transform_indices = @transform_7, window_bounds = array<i64: 8, 1>}]} {
    %c0 = arith.constant 0 : index
    %c0_0 = arith.constant 0 : index
    %0 = vector.load %arg2[%c0, %c0_0] : memref<16x128xbf16, #tpu.memory_space<vmem>>, vector<16x128xbf16>
    %c0_1 = arith.constant 0 : index
    %c0_2 = arith.constant 0 : index
    %1 = vector.load %arg1[%c0_1, %c0_2] : memref<8x16xf32, #tpu.memory_space<vmem>>, vector<8x16xf32>
    %2 = arith.truncf %1 : vector<8x16xf32> to vector<8x16xbf16>
    %cst = arith.constant dense<0.000000e+00> : vector<8x128xf32>
    %3 = tpu.matmul %2, %0, %cst {dimension_numbers = #tpu.dot_dimension_numbers<[1], [0], [0], [1], [0, 0, 1, 1], [], []>} : vector<8x16xbf16>, vector<16x128xbf16>, vector<8x128xf32> -> vector<8x128xf32>
    %c0_3 = arith.constant 0 : index
    %c0_4 = arith.constant 0 : index
    %4 = vector.load %arg3[%c0_3, %c0_4] : memref<1x128xf32, #tpu.memory_space<vmem>>, vector<1x128xf32>
    %5 = vector.broadcast %4 : vector<1x128xf32> to vector<8x128xf32>
    %6 = arith.addf %3, %5 : vector<8x128xf32>
    %cst_5 = arith.constant 0.000000e+00 : f32
    %7 = vector.broadcast %cst_5 : f32 to vector<8x128xf32>
    %8 = arith.maximumf %6, %7 : vector<8x128xf32>
    %c0_6 = arith.constant 0 : index
    %c0_7 = arith.constant 0 : index
    %9 = vector.load %arg4[%c0_6, %c0_7] : memref<128x128xbf16, #tpu.memory_space<vmem>>, vector<128x128xbf16>
    %10 = arith.truncf %8 : vector<8x128xf32> to vector<8x128xbf16>
    %cst_8 = arith.constant dense<0.000000e+00> : vector<8x128xf32>
    %11 = tpu.matmul %10, %9, %cst_8 {dimension_numbers = #tpu.dot_dimension_numbers<[1], [0], [0], [1], [0, 0, 1, 1], [], []>} : vector<8x128xbf16>, vector<128x128xbf16>, vector<8x128xf32> -> vector<8x128xf32>
    %c0_9 = arith.constant 0 : index
    %c0_10 = arith.constant 0 : index
    %12 = vector.load %arg5[%c0_9, %c0_10] : memref<1x128xf32, #tpu.memory_space<vmem>>, vector<1x128xf32>
    %13 = vector.broadcast %12 : vector<1x128xf32> to vector<8x128xf32>
    %14 = arith.addf %11, %13 : vector<8x128xf32>
    %cst_11 = arith.constant 0.000000e+00 : f32
    %15 = vector.broadcast %cst_11 : f32 to vector<8x128xf32>
    %16 = arith.maximumf %14, %15 : vector<8x128xf32>
    %c0_12 = arith.constant 0 : index
    %c0_13 = arith.constant 0 : index
    %17 = vector.load %arg6[%c0_12, %c0_13] : memref<1x128xf32, #tpu.memory_space<vmem>>, vector<1x128xf32>
    %18 = vector.broadcast %17 : vector<1x128xf32> to vector<8x128xf32>
    %19 = arith.mulf %16, %18 : vector<8x128xf32>
    %cst_14 = arith.constant dense<0.000000e+00> : vector<8xf32>
    %20 = vector.multi_reduction <add>, %19, %cst_14 [1] : vector<8x128xf32> to vector<8xf32>
    %21 = vector.shape_cast %20 : vector<8xf32> to vector<8x1xf32>
    %c0_15 = arith.constant 0 : index
    %c0_16 = arith.constant 0 : index
    %22 = vector.load %arg7[%c0_15, %c0_16] : memref<1x1xf32, #tpu.memory_space<vmem>>, vector<1x1xf32>
    %23 = vector.broadcast %22 : vector<1x1xf32> to vector<8x1xf32>
    %24 = arith.addf %21, %23 : vector<8x1xf32>
    %c0_17 = arith.constant 0 : index
    %c0_18 = arith.constant 0 : index
    %25 = vector.load %arg8[%c0_17, %c0_18] : memref<8x1xf32, #tpu.memory_space<vmem>>, vector<8x1xf32>
    tpu.vector_store %arg8[%c0_17, %c0_18], %24 {strides = array<i32>} : memref<8x1xf32, #tpu.memory_space<vmem>>, vector<8x1xf32>,
    return
  }
  func.func @transform_0(%arg0: i32) -> (i32, i32) {
    %c0_i32 = arith.constant 0 : i32
    %c0_i32_0 = arith.constant 0 : i32
    return %arg0, %c0_i32 : i32, i32
  }
  func.func @transform_1(%arg0: i32) -> (i32, i32) {
    %c0_i32 = arith.constant 0 : i32
    %c0_i32_0 = arith.constant 0 : i32
    %c0_i32_1 = arith.constant 0 : i32
    return %c0_i32, %c0_i32_0 : i32, i32
  }
  func.func @transform_2(%arg0: i32) -> (i32, i32) {
    %c0_i32 = arith.constant 0 : i32
    %c0_i32_0 = arith.constant 0 : i32
    %c0_i32_1 = arith.constant 0 : i32
    return %c0_i32, %c0_i32_0 : i32, i32
  }
  func.func @transform_3(%arg0: i32) -> (i32, i32) {
    %c0_i32 = arith.constant 0 : i32
    %c0_i32_0 = arith.constant 0 : i32
    %c0_i32_1 = arith.constant 0 : i32
    return %c0_i32, %c0_i32_0 : i32, i32
  }
  func.func @transform_4(%arg0: i32) -> (i32, i32) {
    %c0_i32 = arith.constant 0 : i32
    %c0_i32_0 = arith.constant 0 : i32
    %c0_i32_1 = arith.constant 0 : i32
    return %c0_i32, %c0_i32_0 : i32, i32
  }
  func.func @transform_5(%arg0: i32) -> (i32, i32) {
    %c0_i32 = arith.constant 0 : i32
    %c0_i32_0 = arith.constant 0 : i32
    %c0_i32_1 = arith.constant 0 : i32
    return %c0_i32, %c0_i32_0 : i32, i32
  }
  func.func @transform_6(%arg0: i32) -> (i32, i32) {
    %c0_i32 = arith.constant 0 : i32
    %c0_i32_0 = arith.constant 0 : i32
    %c0_i32_1 = arith.constant 0 : i32
    return %c0_i32, %c0_i32_0 : i32, i32
  }
  func.func @transform_7(%arg0: i32) -> (i32, i32) {
    %c0_i32 = arith.constant 0 : i32
    %c0_i32_0 = arith.constant 0 : i32
    return %arg0, %c0_i32 : i32, i32
  }
}

</mosaic_0001>

<bundles_post_ra>
// kernel: value_network_forward.1
= control target key start
LH: loop header
LB: loop body
LE: loop exit
PB: predicated region body
PF: predicated region fallthrough
CT: control target
= control target key end

     0   :  { %s471_s0 = inlined_call_operand.hbm [shape: f32[8,16], index: 0, kind: input, shape index: {}]   ;;  %s472_s1 = inlined_call_operand.hbm [shape: bf16[16,128], index: 1, kind: input, shape index: {}]   ;;  %s473_s2 = inlined_call_operand.vmem [shape: f32[1,128], index: 2, kind: input, shape index: {}]   ;;  %s474_s3 = inlined_call_operand.hbm [shape: bf16[128,128], index: 3, kind: input, shape index: {}]   ;;  %s475_s4 = inlined_call_operand.vmem [shape: f32[1,128], index: 4, kind: input, shape index: {}]   ;;  %s476_s5 = inlined_call_operand.vmem [shape: f32[1,128], index: 5, kind: input, shape index: {}]   ;;  %s477_s6 = inlined_call_operand.<no memory space> [shape: f32[1,1], index: 6, kind: input, shape index: {}]   ;;  %s478_s7 = inlined_call_operand.vmem [shape: f32[8,1], index: 7, kind: output, shape index: {}]  }
   0x1   :  { %v12_v0 = vstv %s477_s6 }
   0x2   :  { %13 = vst [vmem:[#allocation2] sm:$0x1] %v12_v0 }
   0x3   :  { %14 = vsyncpa [#allocation4], 0 }
   0x4   :  { %15 = vsyncpa [#allocation6], 0  ;;  %s400_s26 = smov [#allocation5]  }
   0x5   :  { %s31_s27 = sshll.u32 %s400_s26, 4  ;;  %s32_s27 = int_to_ptr.vmem [resolvable:$true] %s31_s27 }
   0x6   :  { %s344_s28 = scalar_lea.vmem %s32_s27, 128  ;;  %p349_p1 = scmp.lt.s32.totalorder %s32_s27, %s32_s27 }
   0x7   :  { %p345_p0 = scmp.ne.s32.totalorder %s32_s27, %s344_s28  ;;  %p350_p2 = scmp.lt.s32.totalorder %s344_s28, %s344_s28 }
   0x9   :  { %p351_p3 = por %p350_p2, %p349_p1 }
   0xb   :  { %p352_p4 = pnand %p351_p3, %p345_p0 }
   0xd   :  { %355 = shalt.err (!%p352_p4)
}
   0xe   :  { %s401_s29 = smov 64   ;;  %s402_s30 = smov 4  }
   0xf   :  { %37 = dma.hbm_to_vmem [thread:$0]  %s472_s1, 128, %s32_s27, [#allocation6], %s401_s29, %s401_s29, %s402_s30  }
  0x10   :  { %s403_s6 = smov [#allocation3]   ;;  %s404_s11 = smov [#allocation7]  }
  0x11   :  { %s22_s10 = sshll.u32 %s403_s6, 4  ;;  %s45_s12 = sshll.u32 %s404_s11, 4  ;;  %s23_s10 = int_to_ptr.vmem [resolvable:$true] %s22_s10  ;;  %s46_s12 = int_to_ptr.vmem [resolvable:$true] %s45_s12 }
  0x12   :  { %s364_s13 = scalar_lea.vmem %s23_s10, 128  ;;  %p369_p6 = scmp.lt.s32.totalorder %s23_s10, %s23_s10 }
  0x13   :  { %p365_p5 = scmp.ne.s32.totalorder %s23_s10, %s364_s13  ;;  %p370_p7 = scmp.lt.s32.totalorder %s364_s13, %s364_s13 }
  0x15   :  { %p371_p8 = por %p370_p7, %p369_p6 }
  0x17   :  { %p372_p9 = pnand %p371_p8, %p365_p5 }
  0x19   :  { %375 = shalt.err (!%p372_p9)
}
  0x1a   :  { %25 = dma.hbm_to_vmem [thread:$0]  %s471_s0, 128, %s23_s10, [#allocation4]  }
  0x1b   :  { %s384_s16 = scalar_lea.vmem %s46_s12, 1024  ;;  %p389_p11 = scmp.lt.s32.totalorder %s46_s12, %s46_s12 }
  0x1c   :  { %p385_p10 = scmp.ne.s32.totalorder %s46_s12, %s384_s16  ;;  %p390_p12 = scmp.lt.s32.totalorder %s384_s16, %s384_s16 }
  0x1e   :  { %p391_p13 = por %p390_p12, %p389_p11 }
  0x20   :  { %p392_p0 = pnand %p391_p13, %p385_p10 }
  0x22   :  { %395 = shalt.err (!%p392_p0)
}
  0x23   :  { %51 = dma.hbm_to_vmem [thread:$0]  %s474_s3, 1024, %s46_s12, [#allocation6], %s401_s29, %s401_s29, %s402_s30  }
  0x24   :  { %396 = dma.done.wait [#allocation4], 128  }
  0x25   :  { %397 = vsyncadd [#allocation4], 4294967168 }
  0x26   :  { %398 = dma.done.wait [#allocation6], 1152  }
  0x27   :  { %399 = vsyncadd [#allocation6], 4294966144  ;;  %v405_v1 = vmov 0.0   ;;  %vm406_vm0 = vmmov 0   ;;  %v327_v2 = vld [vmem:[#allocation5] sm:$0xff]   ;;  %v70_v3 = vld [vmem:[#allocation3] sm:$0xff] }
  0x28   :  { %294 = vmatprep.subr.bf16.mxu0 %v405_v1  ;;  %296 = vmatprep.mubr.msk.bf16.mxu0 %vm406_vm0, %v405_v1  ;;  %v71_v4 = vpack.c.bf16 %v70_v3, %v70_v3  ;;  %vm85_vm1 = vcmask 130048   ;;  %v328_v5 = vld [vmem:[#allocation7 + $0x38] sm:$0xff]   ;;  %v329_v6 = vld [vmem:[#allocation7 + $0x30] sm:$0xff]   ;;  %v330_v7 = vld [vmem:[#allocation7 + $0x28] sm:$0xff]   ;;  %vm261_vm2 = vcmask 7168  }
  0x29   :  { %300 = vmatprep.subr.bf16.mxu1 %v405_v1  ;;  %316 = vmatprep.mubr.msk.bf16.mxu1 %vm406_vm0, %v405_v1  ;;  %v331_v8 = vld [vmem:[#allocation7 + $0x20] sm:$0xff]   ;;  %v332_v9 = vld [vmem:[#allocation7 + $0x18] sm:$0xff]   ;;  %v333_v10 = vld [vmem:[#allocation7 + $0x10] sm:$0xff]  }
  0x2a   :  { %295 = vmatpush3.bf16.msra.mxu0 %v327_v2  ;;  %301 = vmatpush3.bf16.msra.mxu1 %v328_v5  ;;  %v334_v11 = vld [vmem:[#allocation7 + $0x8] sm:$0xff]   ;;  %v335_v12 = vld [vmem:[#allocation7] sm:$0xff]  }
  0x2b   :  { %302 = vmatprep.subr.bf16.mxu1 %v405_v1  ;;  %v269_v13 = vld [vmem:[%s473_s2] ss:$0 sm:$0xff] }
  0x2c   :  { %v272_v21 = vld [vmem:[%s475_s4] ss:$0 sm:$0xff] }
  0x2d   :  { %297 = vmatmul.mubr.msk.bf16.vlgmr.msra.gmra.mxu0 %vm85_vm1, %v71_v4  ;;  %v281_v25 = vld [vmem:[%s476_s5] ss:$0 sm:$0xff] }
  0x2e   :  { %303 = vmatpush3.bf16.msra.mxu1 %v329_v6  ;;  %v282_v30 = vld [vmem:[#allocation2] ss:$0 sm:$0xff] }
  0x2f   :  { %304 = vmatprep.subr.bf16.mxu1 %v405_v1 }
  0x32   :  { %305 = vmatpush3.bf16.msra.mxu1 %v330_v7 }
  0x33   :  { %306 = vmatprep.subr.bf16.mxu1 %v405_v1 }
  0x36   :  { %307 = vmatpush3.bf16.msra.mxu1 %v331_v8 }
  0x37   :  { %308 = vmatprep.subr.bf16.mxu1 %v405_v1 }
  0x3a   :  { %309 = vmatpush3.bf16.msra.mxu1 %v332_v9 }
  0x3b   :  { %310 = vmatprep.subr.bf16.mxu1 %v405_v1 }
  0x3e   :  { %311 = vmatpush3.bf16.msra.mxu1 %v333_v10 }
  0x3f   :  { %312 = vmatprep.subr.bf16.mxu1 %v405_v1 }
  0x42   :  { %313 = vmatpush3.bf16.msra.mxu1 %v334_v11 }
  0x43   :  { %314 = vmatprep.subr.bf16.mxu1 %v405_v1 }
  0x46   :  { %315 = vmatpush3.bf16.msra.mxu1 %v335_v12 }
  0xed   :  { %v123_v14 = vpop.f32.mrf.mxu0 }
  0xee   :  { %v124_v15 = vadd.f32 %v269_v13, %v123_v14 }
  0xef   :  { %v298_v16 = vpop.f32.mrf.mxu0 }
  0xf0   :  { %v129_v17 = vmax.f32 %v124_v15, 0.0 }
  0xf1   :  { %v126_v18 = vpop.f32.mrf.mxu0 }
  0xf2   :  { %v146_v19 = vpack.c.bf16 %v129_v17, %v129_v17 }
  0xf3   :  { %v299_v20 = vpop.f32.mrf.mxu0 }
  0xf4   :  { %317 = vmatmul.mubr.bf16.vlgmr.msra.gmra.mxu1 %v146_v19 }
 0x1b4   :  { %v236_v22 = vpop.f32.mrf.mxu1 }
 0x1b5   :  { %v237_v23 = vadd.f32 %v272_v21, %v236_v22 }
 0x1b6   :  { %v318_v24 = vpop.f32.mrf.mxu1 }
 0x1b7   :  { %v242_v26 = vmax.f32 %v237_v23, 0.0 }
 0x1b8   :  { %v239_v27 = vpop.f32.mrf.mxu1 }
 0x1b9   :  { %v250_v28 = vmul.f32 %v281_v25, %v242_v26 }
 0x1ba   :  { %v319_v29 = vpop.f32.mrf.mxu1 }
 0x1bb   :  { %251 = vadd.xlane.f32.xlu0 %v250_v28 }
 0x244   :  { %v252_v31 = vpop.xlane.xlu0 %251 }
 0x245   :  { %v260_v32 = vadd.f32 %v282_v30, %v252_v31 }
 0x247   :  { %262 = vst.msk [vmem:[%s478_s7] sm:$0xff] %vm261_vm2, %v260_v32 }
 0x248   :  { %267 = vsyncpa [#allocation4], 1 }
 0x249   :  { %268 = vsyncpa [#allocation6], 1 }

</bundles_post_ra>
